<compile_context>
chip_gen: v7x
topology: tpu7x:2x2x1
jax: 0.10.0
libtpu: 0.0.40
codegen_flags: <defaults>
</compile_context>

<pallas_src>
import jax
import jax.numpy as jnp
from jax.experimental import pallas as pl
from jax.experimental.pallas import tpu as pltpu


def dal_kernel(fs_ref, ft_ref, w1_ref, b1_ref, w2_ref, b2_ref, out_ref):
    """One grid step: one (tm, D) source tile + one (tm, D) target tile."""
    w1 = w1_ref[...]                      # (D, H) bf16, VMEM-resident
    b1 = b1_ref[...]                      # (1, H) f32
    w2 = w2_ref[...]                      # (1, H) f32 (row form of H->1 weight)
    b2 = b2_ref[0, 0]                     # scalar f32 from SMEM

    def logits_of(f_tile):
        # bf16 x bf16 MXU matmul with f32 accumulation.
        h = jnp.dot(f_tile, w1, preferred_element_type=jnp.float32) + b1
        h = jnp.maximum(h, 0.0)                                    # ReLU (VPU)
        # H -> 1 projection on VPU + XLU lane reduce (keeps MXU free).
        return jnp.sum(h * w2, axis=-1, keepdims=True) + b2        # (tm, 1)

    logit_s = logits_of(fs_ref[...])
    logit_t = logits_of(ft_ref[...])

    # torch.nn.BCELoss(sigmoid(x), 0) numerics: d = sigmoid(x) in f32, then
    # min(-log(1-d), 100).  For large logits the f32 sigmoid saturates to 1,
    # log(0) -> -inf and the clamp yields exactly 100, matching PyTorch.
    # (tail stays (tm, 1) lane-sparse on purpose — it sits under MXU slack.)
    d_t = 1.0 / (1.0 + jnp.exp(-logit_t))
    bce_sum = jnp.sum(jnp.minimum(-jnp.log(1.0 - d_t), 100.0))

    # binary_accuracy: pred = (sigmoid(x) >= 0.5) == (x >= 0)
    correct_s = jnp.sum((logit_s >= 0.0).astype(jnp.float32))   # labels = ones
    correct_t = jnp.sum((logit_t < 0.0).astype(jnp.float32))    # labels = zeros

    # Pack the three partial scalars into distinct sublanes of one lane-dense
    # (1, 8, 128) block -> one unmasked store, one output DMA per step.
    row = jax.lax.broadcasted_iota(jnp.int32, out_ref.shape, 1)
    out_ref[...] = jnp.where(row == 0, bce_sum,
                   jnp.where(row == 1, correct_s,
                   jnp.where(row == 2, correct_t, 0.0)))


def _pick_row_tile(B):
    """Largest tile <= 256 that divides B while keeping >= 2 grid steps,
    never below the bf16 (16, 128) minimum tile."""
    tm = 256
    while tm > 16 and (B % tm != 0 or B // tm < 2):
        tm //= 2
    if B % tm != 0:
        tm = B                      # tiny / odd batch: single grid step
    return tm


def domain_adversarial_loss(f_s, f_t, w_t, w1, b1, w2_row, b2, *, tm=None):
    """Returns (loss, domain_discriminator_accuracy)."""
    B, D = f_s.shape
    H = w1.shape[1]
    if tm is None:
        tm = _pick_row_tile(B)
    assert B % tm == 0, "row tile must divide the per-domain batch"
    nt = B // tm

    # VMEM footprint: two feature streams double-buffered by the pipeline,
    # weights single-buffered (full-array VMEM residents), merged output
    # double-buffered.  Cap at 48 MiB so v7x's 64 MiB physical VMEM keeps
    # headroom for Mosaic internal scratch.
    feat_bytes = 2 * 2 * tm * D * f_s.dtype.itemsize
    weight_bytes = D * H * w1.dtype.itemsize + 2 * H * 4 + 4
    out_bytes = 2 * 8 * 128 * 4
    vmem_limit = int(min(max(feat_bytes + weight_bytes + out_bytes + (4 << 20),
                             16 << 20),
                         48 << 20))

    f_spec_s = pl.BlockSpec((tm, D), lambda i: (i, 0))
    f_spec_t = pl.BlockSpec((tm, D), lambda i: (i, 0))
    # Grid-invariant operands: whole array resident in VMEM, single-buffered.
    w1_spec = pl.BlockSpec(memory_space=pltpu.MemorySpace.VMEM)
    b1_spec = pl.BlockSpec(memory_space=pltpu.MemorySpace.VMEM)
    w2_spec = pl.BlockSpec(memory_space=pltpu.MemorySpace.VMEM)
    b2_spec = pl.BlockSpec(memory_space=pltpu.MemorySpace.SMEM)
    part_spec = pl.BlockSpec((1, 8, 128), lambda i: (i, 0, 0))
    part_shape = jax.ShapeDtypeStruct((nt, 8, 128), jnp.float32)

    cost = pl.CostEstimate(
        flops=2 * (2 * B) * D * H + 6 * B * H,
        transcendentals=2 * B,
        bytes_accessed=(2 * B * D * f_s.dtype.itemsize
                        + D * H * w1.dtype.itemsize
                        + 2 * H * 4
                        + nt * 8 * 128 * 4),
    )

    parts = pl.pallas_call(
        dal_kernel,
        grid=(nt,),
        in_specs=[f_spec_s, f_spec_t, w1_spec, b1_spec, w2_spec, b2_spec],
        out_specs=part_spec,
        out_shape=part_shape,
        compiler_params=pltpu.CompilerParams(
            dimension_semantics=("parallel",),
            vmem_limit_bytes=vmem_limit,
        ),
        cost_estimate=cost,
    )(f_s, f_t, w1, b1, w2_row, b2)

    # Tiny final reduction + w_t weighting in plain JAX.
    bce_mean = jnp.sum(parts[:, 0, 0]) / B
    acc_s = jnp.sum(parts[:, 1, 0]) * (100.0 / B)
    acc_t = jnp.sum(parts[:, 2, 0]) * (100.0 / B)
    wt_mean = jnp.mean(w_t.astype(jnp.float32))
    loss = 0.5 * wt_mean * bce_mean                  # 0.5 * mean(w_t * bce)
    acc = 0.5 * (acc_s + acc_t)
    return loss, acc


def reference(f_s, f_t, w_t, w1, b1, w2_row, b2):
    """Pure-JAX reference mirroring the PyTorch forward."""
    B = f_s.shape[0]
    f = jnp.concatenate([f_s, f_t], axis=0)
    h = jnp.maximum(jnp.dot(f, w1, preferred_element_type=jnp.float32) + b1, 0.0)
    logits = jnp.dot(h, w2_row.reshape(-1, 1)) + b2[0, 0]
    d = jax.nn.sigmoid(logits)
    d_s, d_t = d[:B], d[B:]
    bce = jnp.mean(jnp.minimum(-jnp.log(1.0 - d_t), 100.0))
    loss = 0.5 * jnp.mean(w_t.astype(jnp.float32) * bce)
    acc_s = 100.0 * jnp.mean((d_s >= 0.5).astype(jnp.float32))
    acc_t = 100.0 * jnp.mean((d_t < 0.5).astype(jnp.float32))
    return loss, 0.5 * (acc_s + acc_t)


if __name__ == "__main__":
    # Small but lane-aligned shapes: per-domain batch=16, feature=256, hidden=128.
    B, D, H = 16, 256, 128

    key = jax.random.PRNGKey(0)
    k_fs, k_ft, k_wt, k_w1, k_b1, k_w2, k_b2 = jax.random.split(key, 7)

    # bf16 features + bf16 W1 keep the hot path at native MXU bf16 rate.
    f_s = jax.random.normal(k_fs, (B, D), dtype=jnp.float32).astype(jnp.bfloat16)
    f_t = jax.random.normal(k_ft, (B, D), dtype=jnp.float32).astype(jnp.bfloat16)
    w_t = jax.random.uniform(k_wt, (B,), dtype=jnp.float32)

    # Deterministic discriminator parameters (synthetic, not a checkpoint load).
    w1 = (0.1 * jax.random.normal(k_w1, (D, H), dtype=jnp.float32)).astype(jnp.bfloat16)
    b1 = 0.1 * jax.random.normal(k_b1, (1, H), dtype=jnp.float32)
    w2_row = 0.1 * jax.random.normal(k_w2, (1, H), dtype=jnp.float32)
    b2 = 0.1 * jax.random.normal(k_b2, (1, 1), dtype=jnp.float32)

    # tm auto-selected (16 here = full per-domain batch, the bf16 minimum tile).
    loss, acc = domain_adversarial_loss(f_s, f_t, w_t, w1, b1, w2_row, b2)
    jax.block_until_ready((loss, acc))

    ref_loss, ref_acc = reference(f_s, f_t, w_t, w1, b1, w2_row, b2)
    assert jnp.allclose(loss, ref_loss, rtol=1e-3, atol=1e-5), (loss, ref_loss)
    assert jnp.allclose(acc, ref_acc, rtol=1e-5, atol=1e-3), (acc, ref_acc)

    print("KERNEL_OK")
</pallas_src>

<mosaic_0001>
module attributes {stable_mosaic.version = 11 : i64} {
  func.func @dal_kernel(%arg0: i32, %arg1: memref<16x256xbf16, #tpu.memory_space<vmem>>, %arg2: memref<16x256xbf16, #tpu.memory_space<vmem>>, %arg3: memref<256x128xbf16, #tpu.memory_space<vmem>>, %arg4: memref<1x128xf32, #tpu.memory_space<vmem>>, %arg5: memref<1x128xf32, #tpu.memory_space<vmem>>, %arg6: memref<1x1xf32, #tpu.memory_space<smem>>, %arg7: memref<1x8x128xf32, #tpu.memory_space<vmem>>) attributes {dimension_semantics = [#tpu.dimension_semantics<parallel>], iteration_bounds = array<i64: 1>, scalar_prefetch = 0 : i64, scratch_operands = 0 : i64, tpu.core_type = #tpu.core_type<tc>, window_params = [{transform_indices = @transform_0, window_bounds = array<i64: 16, 256>}, {transform_indices = @transform_1, window_bounds = array<i64: 16, 256>}, {pipeline_mode = #tpu.pipeline_mode<synchronous>, transform_indices = @transform_2, window_bounds = array<i64: 256, 128>}, {pipeline_mode = #tpu.pipeline_mode<synchronous>, transform_indices = @transform_3, window_bounds = array<i64: 1, 128>}, {pipeline_mode = #tpu.pipeline_mode<synchronous>, transform_indices = @transform_4, window_bounds = array<i64: 1, 128>}, {transform_indices = @transform_5, window_bounds = array<i64: 1, 1>}, {transform_indices = @transform_6, window_bounds = array<i64: 1, 8, 128>}]} {
    %c0 = arith.constant 0 : index
    %c0_0 = arith.constant 0 : index
    %0 = vector.load %arg3[%c0, %c0_0] : memref<256x128xbf16, #tpu.memory_space<vmem>>, vector<256x128xbf16>
    %c0_1 = arith.constant 0 : index
    %c0_2 = arith.constant 0 : index
    %1 = vector.load %arg4[%c0_1, %c0_2] : memref<1x128xf32, #tpu.memory_space<vmem>>, vector<1x128xf32>
    %c0_3 = arith.constant 0 : index
    %c0_4 = arith.constant 0 : index
    %2 = vector.load %arg5[%c0_3, %c0_4] : memref<1x128xf32, #tpu.memory_space<vmem>>, vector<1x128xf32>
    %c0_5 = arith.constant 0 : index
    %c0_6 = arith.constant 0 : index
    %3 = memref.load %arg6[%c0_5, %c0_6] : memref<1x1xf32, #tpu.memory_space<smem>>
    %c0_7 = arith.constant 0 : index
    %c0_8 = arith.constant 0 : index
    %4 = vector.load %arg1[%c0_7, %c0_8] : memref<16x256xbf16, #tpu.memory_space<vmem>>, vector<16x256xbf16>
    %cst = arith.constant dense<0.000000e+00> : vector<16x128xf32>
    %5 = tpu.matmul %4, %0, %cst {dimension_numbers = #tpu.dot_dimension_numbers<[1], [0], [0], [1], [0, 0, 1, 1], [], []>} : vector<16x256xbf16>, vector<256x128xbf16>, vector<16x128xf32> -> vector<16x128xf32>
    %6 = vector.broadcast %1 : vector<1x128xf32> to vector<16x128xf32>
    %7 = arith.addf %5, %6 : vector<16x128xf32>
    %cst_9 = arith.constant 0.000000e+00 : f32
    %8 = vector.broadcast %cst_9 : f32 to vector<16x128xf32>
    %9 = arith.maximumf %7, %8 : vector<16x128xf32>
    %10 = vector.broadcast %2 : vector<1x128xf32> to vector<16x128xf32>
    %11 = arith.mulf %9, %10 : vector<16x128xf32>
    %cst_10 = arith.constant dense<0.000000e+00> : vector<16xf32>
    %12 = vector.multi_reduction <add>, %11, %cst_10 [1] : vector<16x128xf32> to vector<16xf32>
    %13 = vector.shape_cast %12 : vector<16xf32> to vector<16x1xf32>
    %14 = vector.broadcast %3 : f32 to vector<16x1xf32>
    %15 = arith.addf %13, %14 : vector<16x1xf32>
    %c0_11 = arith.constant 0 : index
    %c0_12 = arith.constant 0 : index
    %16 = vector.load %arg2[%c0_11, %c0_12] : memref<16x256xbf16, #tpu.memory_space<vmem>>, vector<16x256xbf16>
    %cst_13 = arith.constant dense<0.000000e+00> : vector<16x128xf32>
    %17 = tpu.matmul %16, %0, %cst_13 {dimension_numbers = #tpu.dot_dimension_numbers<[1], [0], [0], [1], [0, 0, 1, 1], [], []>} : vector<16x256xbf16>, vector<256x128xbf16>, vector<16x128xf32> -> vector<16x128xf32>
    %18 = vector.broadcast %1 : vector<1x128xf32> to vector<16x128xf32>
    %19 = arith.addf %17, %18 : vector<16x128xf32>
    %cst_14 = arith.constant 0.000000e+00 : f32
    %20 = vector.broadcast %cst_14 : f32 to vector<16x128xf32>
    %21 = arith.maximumf %19, %20 : vector<16x128xf32>
    %22 = vector.broadcast %2 : vector<1x128xf32> to vector<16x128xf32>
    %23 = arith.mulf %21, %22 : vector<16x128xf32>
    %cst_15 = arith.constant dense<0.000000e+00> : vector<16xf32>
    %24 = vector.multi_reduction <add>, %23, %cst_15 [1] : vector<16x128xf32> to vector<16xf32>
    %25 = vector.shape_cast %24 : vector<16xf32> to vector<16x1xf32>
    %26 = vector.broadcast %3 : f32 to vector<16x1xf32>
    %27 = arith.addf %25, %26 : vector<16x1xf32>
    %cst_16 = arith.constant 0.000000e+00 : f32
    %28 = vector.broadcast %cst_16 : f32 to vector<16x1xf32>
    %29 = arith.subf %28, %27 : vector<16x1xf32>
    %30 = math.exp %29 : vector<16x1xf32>
    %cst_17 = arith.constant 1.000000e+00 : f32
    %31 = vector.broadcast %cst_17 : f32 to vector<16x1xf32>
    %32 = arith.addf %31, %30 : vector<16x1xf32>
    %cst_18 = arith.constant 1.000000e+00 : f32
    %33 = vector.broadcast %cst_18 : f32 to vector<16x1xf32>
    %34 = arith.divf %33, %32 : vector<16x1xf32>
    %cst_19 = arith.constant 1.000000e+00 : f32
    %35 = vector.broadcast %cst_19 : f32 to vector<16x1xf32>
    %36 = arith.subf %35, %34 : vector<16x1xf32>
    %37 = math.log %36 : vector<16x1xf32>
    %cst_20 = arith.constant 0.000000e+00 : f32
    %38 = vector.broadcast %cst_20 : f32 to vector<16x1xf32>
    %39 = arith.subf %38, %37 : vector<16x1xf32>
    %cst_21 = arith.constant 1.000000e+02 : f32
    %40 = vector.broadcast %cst_21 : f32 to vector<16x1xf32>
    %41 = arith.minimumf %39, %40 : vector<16x1xf32>
    %42 = vector.shape_cast %41 : vector<16x1xf32> to vector<1x16x1xf32>
    %cst_22 = arith.constant dense<0.000000e+00> : vector<1xf32>
    %43 = vector.multi_reduction <add>, %42, %cst_22 [1, 2] : vector<1x16x1xf32> to vector<1xf32>
    %44 = vector.shape_cast %43 : vector<1xf32> to vector<1x1x1xf32>
    %45 = vector.extract %44[0, 0, 0] : f32 from vector<1x1x1xf32>
    %cst_23 = arith.constant 0.000000e+00 : f32
    %46 = vector.broadcast %cst_23 : f32 to vector<16x1xf32>
    %47 = arith.cmpf oge, %15, %46 : vector<16x1xf32>
    %48 = arith.extui %47 : vector<16x1xi1> to vector<16x1xi32>
    %49 = arith.sitofp %48 : vector<16x1xi32> to vector<16x1xf32>
    %50 = vector.shape_cast %49 : vector<16x1xf32> to vector<1x16x1xf32>
    %cst_24 = arith.constant dense<0.000000e+00> : vector<1xf32>
    %51 = vector.multi_reduction <add>, %50, %cst_24 [1, 2] : vector<1x16x1xf32> to vector<1xf32>
    %52 = vector.shape_cast %51 : vector<1xf32> to vector<1x1x1xf32>
    %53 = vector.extract %52[0, 0, 0] : f32 from vector<1x1x1xf32>
    %cst_25 = arith.constant 0.000000e+00 : f32
    %54 = vector.broadcast %cst_25 : f32 to vector<16x1xf32>
    %55 = arith.cmpf olt, %27, %54 : vector<16x1xf32>
    %56 = arith.extui %55 : vector<16x1xi1> to vector<16x1xi32>
    %57 = arith.sitofp %56 : vector<16x1xi32> to vector<16x1xf32>
    %58 = vector.shape_cast %57 : vector<16x1xf32> to vector<1x16x1xf32>
    %cst_26 = arith.constant dense<0.000000e+00> : vector<1xf32>
    %59 = vector.multi_reduction <add>, %58, %cst_26 [1, 2] : vector<1x16x1xf32> to vector<1xf32>
    %60 = vector.shape_cast %59 : vector<1xf32> to vector<1x1x1xf32>
    %61 = vector.extract %60[0, 0, 0] : f32 from vector<1x1x1xf32>
    %62 = tpu.iota {dimensions = array<i32: 1>} : vector<1x8x128xi32>
    %c0_i32 = arith.constant 0 : i32
    %63 = vector.broadcast %c0_i32 : i32 to vector<1x8x128xi32>
    %64 = arith.cmpi eq, %62, %63 : vector<1x8x128xi32>
    %c1_i32 = arith.constant 1 : i32
    %65 = vector.broadcast %c1_i32 : i32 to vector<1x8x128xi32>
    %66 = arith.cmpi eq, %62, %65 : vector<1x8x128xi32>
    %c2_i32 = arith.constant 2 : i32
    %67 = vector.broadcast %c2_i32 : i32 to vector<1x8x128xi32>
    %68 = arith.cmpi eq, %62, %67 : vector<1x8x128xi32>
    %cst_27 = arith.constant 0.000000e+00 : f32
    %69 = vector.broadcast %61 : f32 to vector<1x8x128xf32>
    %70 = vector.broadcast %cst_27 : f32 to vector<1x8x128xf32>
    %71 = arith.select %68, %69, %70 : vector<1x8x128xi1>, vector<1x8x128xf32>
    %72 = vector.broadcast %53 : f32 to vector<1x8x128xf32>
    %73 = arith.select %66, %72, %71 : vector<1x8x128xi1>, vector<1x8x128xf32>
    %74 = vector.broadcast %45 : f32 to vector<1x8x128xf32>
    %75 = arith.select %64, %74, %73 : vector<1x8x128xi1>, vector<1x8x128xf32>
    %c0_28 = arith.constant 0 : index
    %c0_29 = arith.constant 0 : index
    %c0_30 = arith.constant 0 : index
    %76 = vector.load %arg7[%c0_28, %c0_29, %c0_30] : memref<1x8x128xf32, #tpu.memory_space<vmem>>, vector<1x8x128xf32>
    tpu.vector_store %arg7[%c0_28, %c0_29, %c0_30], %75 {strides = array<i32>} : memref<1x8x128xf32, #tpu.memory_space<vmem>>, vector<1x8x128xf32>,
    return
  }
  func.func @transform_0(%arg0: i32) -> (i32, i32) {
    %c0_i32 = arith.constant 0 : i32
    %c0_i32_0 = arith.constant 0 : i32
    return %arg0, %c0_i32 : i32, i32
  }
  func.func @transform_1(%arg0: i32) -> (i32, i32) {
    %c0_i32 = arith.constant 0 : i32
    %c0_i32_0 = arith.constant 0 : i32
    return %arg0, %c0_i32 : i32, i32
  }
  func.func @transform_2(%arg0: i32) -> (i32, i32) {
    %c0_i32 = arith.constant 0 : i32
    %c0_i32_0 = arith.constant 0 : i32
    %c0_i32_1 = arith.constant 0 : i32
    return %c0_i32, %c0_i32_0 : i32, i32
  }
  func.func @transform_3(%arg0: i32) -> (i32, i32) {
    %c0_i32 = arith.constant 0 : i32
    %c0_i32_0 = arith.constant 0 : i32
    %c0_i32_1 = arith.constant 0 : i32
    return %c0_i32, %c0_i32_0 : i32, i32
  }
  func.func @transform_4(%arg0: i32) -> (i32, i32) {
    %c0_i32 = arith.constant 0 : i32
    %c0_i32_0 = arith.constant 0 : i32
    %c0_i32_1 = arith.constant 0 : i32
    return %c0_i32, %c0_i32_0 : i32, i32
  }
  func.func @transform_5(%arg0: i32) -> (i32, i32) {
    %c0_i32 = arith.constant 0 : i32
    %c0_i32_0 = arith.constant 0 : i32
    %c0_i32_1 = arith.constant 0 : i32
    return %c0_i32, %c0_i32_0 : i32, i32
  }
  func.func @transform_6(%arg0: i32) -> (i32, i32, i32) {
    %c0_i32 = arith.constant 0 : i32
    %c0_i32_0 = arith.constant 0 : i32
    %c0_i32_1 = arith.constant 0 : i32
    return %arg0, %c0_i32, %c0_i32_0 : i32, i32, i32
  }
}

</mosaic_0001>

<bundles_post_ra>
// kernel: tpu_custom_call.1
= control target key start
LH: loop header
LB: loop body
LE: loop exit
PB: predicated region body
PF: predicated region fallthrough
CT: control target
= control target key end

     0   :  { %12 = vsyncpa [#allocation4], 0  ;;  %s763_s0 = inlined_call_operand.hbm [shape: bf16[16,256], index: 0, kind: input, shape index: {}]   ;;  %s764_s1 = inlined_call_operand.hbm [shape: bf16[16,256], index: 1, kind: input, shape index: {}]   ;;  %s765_s2 = inlined_call_operand.hbm [shape: bf16[256,128], index: 2, kind: input, shape index: {}]   ;;  %s766_s3 = inlined_call_operand.vmem [shape: f32[1,128], index: 3, kind: input, shape index: {}]   ;;  %s767_s4 = inlined_call_operand.vmem [shape: f32[1,128], index: 4, kind: input, shape index: {}]   ;;  %s768_s5 = inlined_call_operand.<no memory space> [shape: f32[1,1], index: 5, kind: input, shape index: {}]   ;;  %s769_s6 = inlined_call_operand.hbm [shape: f32[1,8,128], index: 6, kind: output, shape index: {}]  }
   0x1   :  { %13 = vsyncpa [#allocation7], 0 }
   0x2   :  { %14 = vsyncpa [#allocation5], 0  ;;  %s649_s21 = smov [#allocation6]   ;;  %s650_s23 = smov [#allocation3]  }
   0x3   :  { %s32_s22 = sshll.u32 %s649_s21, 4  ;;  %s20_s24 = sshll.u32 %s650_s23, 4  ;;  %s33_s22 = int_to_ptr.vmem [resolvable:$true] %s32_s22  ;;  %s693_s24 = int_to_ptr.vmem [resolvable:$true] %s20_s24 }
   0x4   :  { %s555_s27 = scalar_lea.hbm %s764_s1, 256 }
   0x5   :  { %p556_p0 = scmp.ne.s32.totalorder %s764_s1, %s555_s27  ;;  %p559_p1 = scmp.lt.u32.totalorder %s555_s27, %s764_s1 }
   0x7   :  { %p561_p2 = pnand %p559_p1, %p556_p0 }
   0x9   :  { %564 = shalt.err (!%p561_p2)
}
   0xa   :  { %s565_s8 = scalar_lea.vmem %s33_s22, 256  ;;  %p570_p4 = scmp.lt.s32.totalorder %s33_s22, %s33_s22 }
   0xb   :  { %p566_p3 = scmp.ne.s32.totalorder %s33_s22, %s565_s8  ;;  %p571_p5 = scmp.lt.s32.totalorder %s565_s8, %s565_s8 }
   0xd   :  { %p572_p6 = por %p571_p5, %p570_p4 }
   0xf   :  { %p573_p7 = pnand %p572_p6, %p566_p3 }
  0x11   :  { %576 = shalt.err (!%p573_p7)
}
  0x12   :  { %s651_s9 = smov 128   ;;  %s652_s10 = smov 8  }
  0x13   :  { %38 = dma.hbm_to_vmem [thread:$0]  %s764_s1, 256, %s33_s22, [#allocation7], %s651_s9, %s651_s9, %s652_s10  }
  0x14   :  { %s577_s15 = scalar_lea.hbm %s763_s0, 256 }
  0x15   :  { %p578_p8 = scmp.ne.s32.totalorder %s763_s0, %s577_s15  ;;  %p581_p9 = scmp.lt.u32.totalorder %s577_s15, %s763_s0 }
  0x17   :  { %p583_p10 = pnand %p581_p9, %p578_p8 }
  0x19   :  { %586 = shalt.err (!%p583_p10)
}
  0x1a   :  { %s587_s20 = scalar_lea.vmem %s693_s24, 256  ;;  %p592_p12 = scmp.lt.s32.totalorder %s693_s24, %s693_s24 }
  0x1b   :  { %p588_p11 = scmp.ne.s32.totalorder %s693_s24, %s587_s20  ;;  %p593_p13 = scmp.lt.s32.totalorder %s587_s20, %s587_s20 }
  0x1d   :  { %p594_p0 = por %p593_p13, %p592_p12 }
  0x1f   :  { %p595_p1 = pnand %p594_p0, %p588_p11 }
  0x21   :  { %598 = shalt.err (!%p595_p1)
}
  0x22   :  { %26 = dma.hbm_to_vmem [thread:$0]  %s763_s0, 256, %s693_s24, [#allocation4], %s651_s9, %s651_s9, %s652_s10  }
  0x23   :  { %s653_s22 = smov [#allocation8]   ;;  %s599_s27 = scalar_lea.hbm %s765_s2, 2048 }
  0x24   :  { %s44_s23 = sshll.u32 %s653_s22, 4  ;;  %p600_p2 = scmp.ne.s32.totalorder %s765_s2, %s599_s27  ;;  %s45_s23 = int_to_ptr.vmem [resolvable:$true] %s44_s23 }
  0x25   :  { %p603_p3 = scmp.lt.u32.totalorder %s599_s27, %s765_s2 }
  0x27   :  { %p605_p4 = pnand %p603_p3, %p600_p2 }
  0x29   :  { %608 = shalt.err (!%p605_p4)
}
  0x2a   :  { %s609_s8 = scalar_lea.vmem %s45_s23, 2048  ;;  %p614_p6 = scmp.lt.s32.totalorder %s45_s23, %s45_s23 }
  0x2b   :  { %p610_p5 = scmp.ne.s32.totalorder %s45_s23, %s609_s8  ;;  %p615_p7 = scmp.lt.s32.totalorder %s609_s8, %s609_s8 }
  0x2d   :  { %p616_p8 = por %p615_p7, %p614_p6 }
  0x2f   :  { %p617_p9 = pnand %p616_p8, %p610_p5 }
  0x31   :  { %620 = shalt.err (!%p617_p9)
}
  0x32   :  { %s654_s0 = smov 64   ;;  %s655_s24 = smov 4  }
  0x33   :  { %50 = dma.hbm_to_vmem [thread:$0]  %s765_s2, 2048, %s45_s23, [#allocation7], %s654_s0, %s654_s0, %s655_s24  }
  0x34   :  { %643 = dma.done.wait [#allocation4], 256  }
  0x35   :  { %644 = vsyncadd [#allocation4], 4294967040 }
  0x36   :  { %645 = dma.done.wait [#allocation7], 2304  }
  0x37   :  { %646 = vsyncadd [#allocation7], 4294964992  ;;  %v521_v0 = vld [vmem:[#allocation8 + $0x40] sm:$0xff]   ;;  %v523_v2 = vld [vmem:[#allocation8 + $0x48] sm:$0xff]   ;;  %v271_v46 = vstv %s768_s5  ;;  %v656_v55 = vmov 0.0   ;;  %vm359_vm1 = vcmask 7168  }
  0x38   :  { %v522_v1 = vld [vmem:[#allocation8] sm:$0xff]   ;;  %484 = vmatprep.subr.bf16.mxu1 %v521_v0  ;;  %462 = vmatprep.subr.bf16.mxu0 %v521_v0  ;;  %v524_v3 = vld [vmem:[#allocation8 + $0x8] sm:$0xff]   ;;  %v525_v4 = vld [vmem:[#allocation8 + $0x50] sm:$0xff]   ;;  %s657_s16 = smov [#allocation9]  }
  0x39   :  { %485 = vmatpush3.bf16.msra.mxu1 %v522_v1  ;;  %463 = vmatpush3.bf16.msra.mxu0 %v522_v1  ;;  %v526_v5 = vld [vmem:[#allocation8 + $0x10] sm:$0xff]   ;;  %v527_v6 = vld [vmem:[#allocation8 + $0x58] sm:$0xff]   ;;  %v529_v8 = vld [vmem:[#allocation8 + $0x60] sm:$0xff]   ;;  %s426_s17 = sshll.u32 %s657_s16, 4  ;;  %s427_s17 = int_to_ptr.vmem [resolvable:$true] %s426_s17 }
  0x3a   :  { %486 = vmatprep.subr.bf16.mxu1 %v523_v2  ;;  %464 = vmatprep.subr.bf16.mxu0 %v523_v2  ;;  %v528_v7 = vld [vmem:[#allocation8 + $0x18] sm:$0xff]   ;;  %v530_v9 = vld [vmem:[#allocation8 + $0x20] sm:$0xff]   ;;  %v531_v10 = vld [vmem:[#allocation8 + $0x68] sm:$0xff]   ;;  %s621_s18 = scalar_lea.vmem %s427_s17, 128  ;;  %p626_p11 = scmp.lt.s32.totalorder %s427_s17, %s427_s17 }
  0x3b   :  { %v539_v11 = vld [vmem:[#allocation6 + $0x4] ss:$8 sps:$4 sm:$0xff]   ;;  %v542_v12 = vld [vmem:[#allocation3 + $0x4] ss:$8 sps:$4 sm:$0xff]   ;;  %v537_v18 = vld [vmem:[#allocation6] ss:$8 sps:$4 sm:$0xff]   ;;  %p622_p10 = scmp.ne.s32.totalorder %s427_s17, %s621_s18  ;;  %p627_p12 = scmp.lt.s32.totalorder %s621_s18, %s621_s18 }
  0x3c   :  { %v532_v13 = vld [vmem:[#allocation8 + $0x28] sm:$0xff]   ;;  %318 = vmatprep.mubr.bf16.mxu1 %v539_v11  ;;  %v533_v14 = vld [vmem:[#allocation8 + $0x70] sm:$0xff]   ;;  %248 = vmatprep.mubr.bf16.mxu0 %v542_v12  ;;  %v535_v16 = vld [vmem:[#allocation8 + $0x78] sm:$0xff]  }
  0x3d   :  { %487 = vmatpush3.bf16.msra.mxu1 %v524_v3  ;;  %465 = vmatpush3.bf16.msra.mxu0 %v524_v3  ;;  %v534_v15 = vld [vmem:[#allocation8 + $0x30] sm:$0xff]   ;;  %v536_v17 = vld [vmem:[#allocation8 + $0x38] sm:$0xff]   ;;  %v540_v19 = vld [vmem:[#allocation3] ss:$8 sps:$4 sm:$0xff]   ;;  %p628_p13 = por %p627_p12, %p626_p11 }
  0x3e   :  { %488 = vmatprep.subr.bf16.mxu1 %v525_v4  ;;  %466 = vmatprep.subr.bf16.mxu0 %v525_v4  ;;  %v436_v22 = vld [vmem:[%s766_s3] ss:$0 sm:$0xff] }
  0x3f   :  { %v455_v33 = vld [vmem:[%s767_s4] ss:$0 sm:$0xff]  ;;  %p629_p0 = pnand %p628_p13, %p622_p10 }
  0x41   :  { %489 = vmatpush3.bf16.msra.mxu1 %v526_v5  ;;  %467 = vmatpush3.bf16.msra.mxu0 %v526_v5 }
  0x42   :  { %490 = vmatprep.subr.bf16.mxu1 %v527_v6  ;;  %468 = vmatprep.subr.bf16.mxu0 %v527_v6 }
  0x45   :  { %491 = vmatpush3.bf16.msra.mxu1 %v528_v7  ;;  %469 = vmatpush3.bf16.msra.mxu0 %v528_v7 }
  0x46   :  { %492 = vmatprep.subr.bf16.mxu1 %v529_v8  ;;  %470 = vmatprep.subr.bf16.mxu0 %v529_v8 }
  0x49   :  { %493 = vmatpush3.bf16.msra.mxu1 %v530_v9  ;;  %471 = vmatpush3.bf16.msra.mxu0 %v530_v9 }
  0x4a   :  { %494 = vmatprep.subr.bf16.mxu1 %v531_v10  ;;  %472 = vmatprep.subr.bf16.mxu0 %v531_v10 }
  0x4d   :  { %495 = vmatpush3.bf16.msra.mxu1 %v532_v13  ;;  %473 = vmatpush3.bf16.msra.mxu0 %v532_v13 }
  0x4e   :  { %496 = vmatprep.subr.bf16.mxu1 %v533_v14  ;;  %474 = vmatprep.subr.bf16.mxu0 %v533_v14 }
  0x51   :  { %497 = vmatpush3.bf16.msra.mxu1 %v534_v15  ;;  %475 = vmatpush3.bf16.msra.mxu0 %v534_v15 }
  0x52   :  { %498 = vmatprep.subr.bf16.mxu1 %v535_v16  ;;  %476 = vmatprep.subr.bf16.mxu0 %v535_v16 }
  0x55   :  { %499 = vmatpush3.bf16.msra.mxu1 %v536_v17  ;;  %477 = vmatpush3.bf16.msra.mxu0 %v536_v17 }
  0x58   :  { %319 = vmatmul.mubr.bf16.vlgmr.msra.gmra.mrb[0].mxu1 %v537_v18  ;;  %249 = vmatmul.mubr.bf16.vlgmr.msra.gmra.mrb[0].mxu0 %v540_v19 }
 0x12b   :  { %v500_v20 = vpop.f32.mrb[0].mxu1  ;;  %v478_v23 = vpop.f32.mrb[0].mxu0 }
 0x12c   :  { %v501_v21 = vpop.f32.mrb[1].mxu1  ;;  %v479_v26 = vpop.f32.mrb[1].mxu0 }
 0x12d   :  { %v502_v24 = vadd.f32 %v501_v21, %v500_v20  ;;  %v503_v25 = vpop.f32.mrb[2].mxu1  ;;  %v480_v28 = vadd.f32 %v479_v26, %v478_v23  ;;  %v481_v29 = vpop.f32.mrb[2].mxu0 }
 0x12e   :  { %v504_v27 = vpop.f32.mrb[3].mxu1  ;;  %v482_v32 = vpop.f32.mrb[3].mxu0 }
 0x12f   :  { %v505_v30 = vadd.f32 %v504_v27, %v503_v25  ;;  %v321_v31 = vadd.f32 %v502_v24, %v436_v22  ;;  %v483_v34 = vadd.f32 %v482_v32, %v481_v29  ;;  %v251_v35 = vadd.f32 %v480_v28, %v436_v22 }
 0x131   :  { %v324_v36 = vadd.f32 %v505_v30, %v436_v22  ;;  %v327_v37 = vmax.f32 %v321_v31, 0.0  ;;  %v254_v38 = vadd.f32 %v483_v34, %v436_v22  ;;  %v257_v39 = vmax.f32 %v251_v35, 0.0 }
 0x133   :  { %v328_v40 = vmax.f32 %v324_v36, 0.0  ;;  %v329_v41 = vmul.f32 %v455_v33, %v327_v37  ;;  %v258_v42 = vmax.f32 %v254_v38, 0.0  ;;  %v265_v43 = vmul.f32 %v455_v33, %v257_v39 }
 0x135   :  { %331 = vadd.xlane.f32.xlu0 %v329_v41  ;;  %267 = vadd.xlane.f32.xlu1 %v265_v43  ;;  %v266_v44 = vmul.f32 %v455_v33, %v258_v42  ;;  %v330_v45 = vmul.f32 %v455_v33, %v328_v40 }
 0x139   :  { %333 = vadd.xlane.f32.xlu0 %v330_v45  ;;  %269 = vadd.xlane.f32.xlu1 %v266_v44 }
 0x1c2   :  { %v332_v47 = vpop.xlane.xlu0 %331  ;;  %v268_v49 = vpop.xlane.xlu1 %267 }
 0x1c3   :  { %v335_v48 = vadd.f32 %v332_v47, %v271_v46  ;;  %v272_v50 = vadd.f32 %v271_v46, %v268_v49 }
 0x1c5   :  { %v337_v51 = vsub.f32 0.0, %v335_v48  ;;  %vm372_vm0 = vcmp.ge.f32.partialorder %v272_v50, 0.0  ;;  %vm390_vm4 = vcmp.lt.f32.partialorder %v335_v48, 0.0 }
 0x1c6   :  { %v334_v52 = vpop.xlane.xlu0 %333  ;;  %v458_v56 = vsel %vm372_vm0, 1.0, %v656_v55  ;;  %v270_v57 = vpop.xlane.xlu1 %269  ;;  %v460_v21 = vsel %vm390_vm4, 1.0, %v656_v55 }
 0x1c7   :  { %v339_v53 = vmul.f32 1.442695, %v337_v51  ;;  %v336_v54 = vadd.f32 %v334_v52, %v271_v46  ;;  %v273_v58 = vadd.f32 %v271_v46, %v270_v57  ;;  %v378_v60 = vsel %vm359_vm1, %v458_v56, 0.0 }
 0x1c8   :  { %v396_v23 = vsel %vm359_vm1, %v460_v21, 0.0  ;;  %v408_v46 = vlaneseq }
 0x1c9   :  { %543 = vpow2.f32 %v339_v53  ;;  %v338_v59 = vsub.f32 0.0, %v336_v54  ;;  %vm373_vm2 = vcmp.ge.f32.partialorder %v273_v58, 0.0  ;;  %vm391_vm3 = vcmp.lt.f32.partialorder %v336_v54, 0.0 }
 0x1ca   :  { %v459_v62 = vsel %vm373_vm2, 1.0, %v656_v55  ;;  %v461_v17 = vsel %vm391_vm3, 1.0, %v656_v55  ;;  %v409_v47 = vshrl.u32 %v408_v46, 7 }
 0x1cb   :  { %v341_v61 = vmul.f32 1.442695, %v338_v59  ;;  %v379_v63 = vsel %vm359_vm1, %v459_v62, 0.0  ;;  %v397_v22 = vsel %vm359_vm1, %v461_v17, 0.0 }
 0x1cc   :  { %v380_v0 = vadd.f32 %v379_v63, %v378_v60  ;;  %v398_v24 = vadd.f32 %v397_v22, %v396_v23  ;;  %vm412_vm5 = vcmp.eq.s32.totalorder %v409_v47, 2  ;;  %vm411_vm6 = vcmp.eq.s32.totalorder %v409_v47, 1 }
 0x1cd   :  { %545 = vpow2.f32 %v341_v61  ;;  %vm410_vm7 = vcmp.eq.s32.totalorder %v409_v47, 0 }
 0x1ce   :  { %381 = vadd.xlane.f32.xlu1 %v380_v0 }
 0x1d3   :  { %v544_v1 = vpop.eup %543 }
 0x1d4   :  { %v343_v2 = vadd.f32 1.0, %v544_v1 }
 0x1d6   :  { %547 = vrcp.f32 %v343_v2 }
 0x1d7   :  { %v546_v3 = vpop.eup %545 }
 0x1d8   :  { %v344_v4 = vadd.f32 1.0, %v546_v3 }
 0x1da   :  { %549 = vrcp.f32 %v344_v4 }
 0x1e0   :  { %v548_v5 = vpop.eup %547 }
 0x1e1   :  { %v349_v6 = vsub.f32 1.0, %v548_v5 }
 0x1e3   :  { %551 = vlog2.f32 %v349_v6 }
 0x1e4   :  { %v550_v7 = vpop.eup %549 }
 0x1e5   :  { %v350_v8 = vsub.f32 1.0, %v550_v7 }
 0x1e7   :  { %553 = vlog2.f32 %v350_v8 }
 0x1ed   :  { %v552_v9 = vpop.eup %551 }
 0x1ee   :  { %v352_v10 = vmul.f32 0.6931472, %v552_v9 }
 0x1f0   :  { %v355_v11 = vsub.f32 0.0, %v352_v10 }
 0x1f1   :  { %v554_v12 = vpop.eup %553 }
 0x1f2   :  { %v354_v13 = vmul.f32 0.6931472, %v554_v12  ;;  %v357_v15 = vmin.f32 %v355_v11, 100.0 }
 0x1f4   :  { %v356_v14 = vsub.f32 0.0, %v354_v13  ;;  %v360_v18 = vsel %vm359_vm1, %v357_v15, 0.0 }
 0x1f6   :  { %v358_v16 = vmin.f32 %v356_v14, 100.0 }
 0x1f8   :  { %v361_v19 = vsel %vm359_vm1, %v358_v16, 0.0 }
 0x1f9   :  { %v362_v20 = vadd.f32 %v361_v19, %v360_v18 }
 0x1fb   :  { %363 = vadd.xlane.f32.xlu0 %v362_v20 }
 0x1ff   :  { %399 = vadd.xlane.f32.xlu0 %v398_v24 }
 0x25b   :  { %v382_v25 = vpop.xlane.xlu1 %381 }
 0x25c   :  { %v383_v26 = vrot.slane %v382_v25, 4 }
 0x25e   :  { %v384_v27 = vadd.f32 %v383_v26, %v382_v25 }
 0x260   :  { %v385_v28 = vrot.slane %v384_v27, 2 }
 0x262   :  { %v386_v32 = vadd.f32 %v385_v28, %v384_v27 }
 0x264   :  { %v387_v38 = vrot.slane %v386_v32, 1 }
 0x266   :  { %v388_v43 = vadd.f32 %v387_v38, %v386_v32 }
 0x288   :  { %v364_v29 = vpop.xlane.xlu0 %363 }
 0x289   :  { %v365_v30 = vrot.slane %v364_v29, 4 }
 0x28b   :  { %v366_v31 = vadd.f32 %v365_v30, %v364_v29 }
 0x28c   :  { %v400_v33 = vpop.xlane.xlu0 %399 }
 0x28d   :  { %v367_v34 = vrot.slane %v366_v31, 2  ;;  %v401_v35 = vrot.slane %v400_v33, 4 }
 0x28f   :  { %v402_v36 = vadd.f32 %v401_v35, %v400_v33  ;;  %v368_v37 = vadd.f32 %v367_v34, %v366_v31 }
 0x291   :  { %v403_v39 = vrot.slane %v402_v36, 2  ;;  %v369_v40 = vrot.slane %v368_v37, 1 }
 0x293   :  { %v404_v41 = vadd.f32 %v403_v39, %v402_v36  ;;  %v370_v42 = vadd.f32 %v369_v40, %v368_v37 }
 0x295   :  { %506 = vpush %v370_v42  ;;  %v405_v44 = vrot.slane %v404_v41, 1 }
 0x296   :  { %508 = vpush %v388_v43 }
 0x297   :  { %v406_v45 = vadd.f32 %v405_v44, %v404_v41 }
 0x299   :  { %510 = vpush %v406_v45 }
 0x2c6   :  { %s507_s4 = spop %506 }
 0x2c7   :  { %s509_s5 = spop %508  ;;  %v417_v51 = vstv %s507_s4 }
 0x2c8   :  { %v415_v49 = vstv %s509_s5 }
 0x2ca   :  { %s511_s15 = spop %510 }
 0x2cb   :  { %v413_v48 = vstv %s511_s15 }
 0x2cc   :  { %v414_v50 = vsel %vm412_vm5, %v413_v48, 0.0 }
 0x2cd   :  { %v416_v52 = vsel %vm411_vm6, %v415_v49, %v414_v50 }
 0x2ce   :  { %v418_v53 = vsel %vm410_vm7, %v417_v51, %v416_v52 }
 0x2cf   :  { %419 = vst [vmem:[#allocation9] sm:$0xff] %v418_v53 }
 0x2d0   :  { %632 = shalt.err (!%p629_p0)
}
 0x2d1   :  { %s633_s1 = scalar_lea.hbm %s769_s6, 128 }
 0x2d2   :  { %p634_p1 = scmp.ne.s32.totalorder %s769_s6, %s633_s1  ;;  %p637_p2 = scmp.lt.u32.totalorder %s633_s1, %s769_s6 }
 0x2d4   :  { %p639_p3 = pnand %p637_p2, %p634_p1 }
 0x2d6   :  { %642 = shalt.err (!%p639_p3)
}
 0x2d7   :  { %429 = dma.vmem_to_hbm [thread:$0]  %s427_s17, 128, %s769_s6, [#allocation5]  }
 0x2d8   :  { %647 = dma.done.wait [#allocation5], 128  }
 0x2d9   :  { %648 = vsyncadd [#allocation5], 4294967168 }
 0x2da   :  { %433 = vsyncpa [#allocation4], 1 }
 0x2db   :  { %434 = vsyncpa [#allocation7], 1 }
 0x2dc   :  { %435 = vsyncpa [#allocation5], 1 }

</bundles_post_ra>
